<compile_context>
chip_gen: v6e
topology: v6e:2x2x1
jax: 0.10.0
libtpu: 0.0.40
codegen_flags: <defaults>
</compile_context>

<pallas_src>
import jax
import jax.numpy as jnp
from jax.experimental import pallas as pl
from jax.experimental.pallas import tpu as pltpu


def _round_up(n, m):
    return (n + m - 1) // m * m


def _make_kernel(compute_dtype):
    def attention_gate_kernel(x_ref, w1t_ref, b1_ref, w2t_ref, b2_ref, o_ref):
        # x_ref:   (TB, F)   input rows, original dtype
        # w1t_ref: (F,  Hp)  first linear weight, pre-transposed
        # b1_ref:  (1,  Hp)  f32
        # w2t_ref: (Hp, F)   second linear weight, pre-transposed
        # b2_ref:  (1,  F)   f32
        x = x_ref[...].astype(jnp.float32)      # f32 copy kept for the gating multiply
        xc = x.astype(compute_dtype)

        # h = relu(x @ W1.T + b1)
        h = jnp.dot(xc, w1t_ref[...], preferred_element_type=jnp.float32) + b1_ref[...]
        h = jnp.maximum(h, 0.0)

        # logits = h @ W2.T + b2   (N dim = F, unpadded -> lane-minimal sigmoid/gating)
        logits = jnp.dot(h.astype(compute_dtype), w2t_ref[...],
                         preferred_element_type=jnp.float32) + b2_ref[...]
        attn = jax.nn.sigmoid(logits)

        o_ref[...] = (x * attn).astype(o_ref.dtype)

    return attention_gate_kernel


def prepare_attention_params(w1, b1, w2, b2, compute_dtype=jnp.float32):
    """One-time parameter prep (hoisted out of the forward path).

    w1: (H, F), b1: (H,), w2: (F, H), b2: (F,)   -- PyTorch nn.Linear layouts.
    Returns (W1^T (F,Hp), b1 (1,Hp), W2^T (Hp,F), b2 (1,F)); H zero-padded to a
    multiple of 8 (exact: padded h lanes are relu(0)=0 and contribute 0).
    """
    H, F = w1.shape
    Hp = _round_up(max(H, 1), 8)
    w1t = jnp.pad(w1.astype(jnp.float32).T, ((0, 0), (0, Hp - H))).astype(compute_dtype)
    w2t = jnp.pad(w2.astype(jnp.float32).T, ((0, Hp - H), (0, 0))).astype(compute_dtype)
    b1p = jnp.pad(b1.astype(jnp.float32).reshape(1, -1), ((0, 0), (0, Hp - H)))
    b2p = b2.astype(jnp.float32).reshape(1, -1)
    return w1t, b1p, w2t, b2p


def _choose_tile_b(B, io_bytes_per_row):
    # Target ~1 MiB of x+out traffic per grid step (amortizes the ~0.35us/step
    # pipeline overhead), multiple of 8, and at least two balanced steps so both
    # v7x TensorCores get work. Never blow the VMEM budget with huge row tiles.
    target_rows = max(8, (1 << 20) // max(io_bytes_per_row, 1))
    half = _round_up((B + 1) // 2, 8)
    tile = min(_round_up(target_rows, 8), half)
    vmem_rows = max(8, ((8 << 20) // max(io_bytes_per_row, 1)) // 8 * 8)
    return max(8, min(tile, vmem_rows))


def attention_module(x, params, *, tile_b=None):
    """x: (..., F); params = prepare_attention_params(w1, b1, w2, b2)."""
    w1t, b1p, w2t, b2p = params
    orig_shape = x.shape
    F = orig_shape[-1]
    Hp = w1t.shape[1]
    assert w1t.shape == (F, Hp) and w2t.shape == (Hp, F)

    xf = x.reshape(-1, F)                    # pure reshape; stays in its own dtype
    B = xf.shape[0]
    in_bytes = xf.dtype.itemsize
    out_bytes = in_bytes
    io_bytes_per_row = F * (in_bytes + out_bytes)

    if tile_b is None:
        tile_b = _choose_tile_b(B, io_bytes_per_row)
    tile_b = max(8, _round_up(tile_b, 8))

    Bp = _round_up(B, tile_b)
    x_p = jnp.pad(xf, ((0, Bp - B), (0, 0))) if Bp != B else xf   # zero rows -> exact
    grid = (Bp // tile_b,)

    # --- VMEM budget: double-buffered x/out tiles + weights + intermediates ---
    w_bytes = (F * Hp + Hp * F) * w1t.dtype.itemsize + (Hp + F) * 4 * 8
    io_buf = 2 * tile_b * io_bytes_per_row
    interm = tile_b * (6 * Hp + 10 * F) + 2 * (Hp + F) * 4
    est = io_buf + 2 * w_bytes + interm

    vmem_cap = 48 << 20                      # safe on v7x (64 MiB physical VMEM)
    try:
        info = pltpu.get_tpu_info()
        if getattr(info, "vmem_capacity_bytes", 0) >= (100 << 20):
            vmem_cap = 96 << 20              # v5e / v6e have 128 MiB
    except Exception:
        pass
    vmem_limit = int(min(vmem_cap, max(2 * est, 16 << 20)))

    cost = pl.CostEstimate(
        flops=int(4 * Bp * F * Hp + Bp * F),
        transcendentals=int(Bp * F),
        bytes_accessed=int(Bp * F * (in_bytes + out_bytes)
                           + 2 * F * Hp * w1t.dtype.itemsize
                           + (Hp + F) * 4),
    )

    kernel = _make_kernel(w1t.dtype)

    def run(weight_pipeline_mode):
        def wspec(shape):
            if weight_pipeline_mode is None:
                return pl.BlockSpec(shape, lambda i: (0, 0))
            return pl.BlockSpec(shape, lambda i: (0, 0),
                                pipeline_mode=weight_pipeline_mode)

        return pl.pallas_call(
            kernel,
            out_shape=jax.ShapeDtypeStruct((Bp, F), x.dtype),
            grid_spec=pltpu.PrefetchScalarGridSpec(
                num_scalar_prefetch=0,
                grid=grid,
                in_specs=[
                    pl.BlockSpec((tile_b, F), lambda i: (i, 0)),   # x rows (streamed)
                    wspec((F, Hp)),                                # W1^T (grid-invariant)
                    wspec((1, Hp)),                                # b1
                    wspec((Hp, F)),                                # W2^T (grid-invariant)
                    wspec((1, F)),                                 # b2
                ],
                out_specs=pl.BlockSpec((tile_b, F), lambda i: (i, 0)),
            ),
            compiler_params=pltpu.CompilerParams(
                dimension_semantics=("parallel",),
                vmem_limit_bytes=vmem_limit,
            ),
            cost_estimate=cost,
        )(x_p, w1t, b1p, w2t, b2p)

    try:
        # Grid-invariant operands: single-buffered (no wasted double-buffer VMEM).
        out_p = run(pl.Buffered(1))
    except Exception:
        # Fallback for jax versions without pipeline_mode / Buffered(1).
        out_p = run(None)

    out = out_p[:B] if Bp != B else out_p
    return out.reshape(orig_shape)


def attention_module_ref(x, w1, b1, w2, b2):
    h = jnp.maximum(x @ w1.T + b1, 0.0)
    a = jax.nn.sigmoid(h @ w2.T + b2)
    return x * a


if __name__ == "__main__":
    key = jax.random.PRNGKey(0)

    # Shapes implied by the PyTorch spec: x = torch.randn(2, 3, 32, 32), in_features = 32.
    lead = (2, 3, 32)
    F = 32
    H = F // 4

    k_x, k_w1, k_b1, k_w2, k_b2 = jax.random.split(key, 5)
    x = jax.random.normal(k_x, (*lead, F), dtype=jnp.float32)

    # Deterministic parameters in PyTorch nn.Linear layouts: W (out, in), b (out,)
    w1 = jax.random.normal(k_w1, (H, F), dtype=jnp.float32) * 0.1
    b1 = jax.random.normal(k_b1, (H,), dtype=jnp.float32) * 0.1
    w2 = jax.random.normal(k_w2, (F, H), dtype=jnp.float32) * 0.1
    b2 = jax.random.normal(k_b2, (F,), dtype=jnp.float32) * 0.1

    # One-time parameter prep (hoisted out of the forward path).
    params = prepare_attention_params(w1, b1, w2, b2, compute_dtype=jnp.float32)

    out = attention_module(x, params)
    out = jax.block_until_ready(out)

    ref = attention_module_ref(x, w1, b1, w2, b2)
    assert out.shape == x.shape
    assert out.dtype == x.dtype
    # f32 matmul path (mem-bound kernel -> no wall-clock cost) -> tight tolerance.
    assert jnp.allclose(out, ref, atol=1e-5, rtol=1e-5), "mismatch vs reference"

    print("KERNEL_OK")
</pallas_src>

<mosaic_0001>
module attributes {stable_mosaic.version = 11 : i64} {
  func.func @attention_gate_kernel(%arg0: i32, %arg1: memref<96x32xf32, #tpu.memory_space<vmem>>, %arg2: memref<32x8xf32, #tpu.memory_space<vmem>>, %arg3: memref<1x8xf32, #tpu.memory_space<vmem>>, %arg4: memref<8x32xf32, #tpu.memory_space<vmem>>, %arg5: memref<1x32xf32, #tpu.memory_space<vmem>>, %arg6: memref<96x32xf32, #tpu.memory_space<vmem>>) attributes {dimension_semantics = [#tpu.dimension_semantics<parallel>], iteration_bounds = array<i64: 2>, scalar_prefetch = 0 : i64, scratch_operands = 0 : i64, tpu.core_type = #tpu.core_type<tc>, window_params = [{transform_indices = @transform_0, window_bounds = array<i64: 96, 32>}, {pipeline_mode = #tpu.pipeline_mode<synchronous>, transform_indices = @transform_1, window_bounds = array<i64: 32, 8>}, {pipeline_mode = #tpu.pipeline_mode<synchronous>, transform_indices = @transform_2, window_bounds = array<i64: 1, 8>}, {pipeline_mode = #tpu.pipeline_mode<synchronous>, transform_indices = @transform_3, window_bounds = array<i64: 8, 32>}, {pipeline_mode = #tpu.pipeline_mode<synchronous>, transform_indices = @transform_4, window_bounds = array<i64: 1, 32>}, {transform_indices = @transform_5, window_bounds = array<i64: 96, 32>}]} {
    %c0 = arith.constant 0 : index
    %c0_0 = arith.constant 0 : index
    %0 = vector.load %arg1[%c0, %c0_0] : memref<96x32xf32, #tpu.memory_space<vmem>>, vector<96x32xf32>
    %c0_1 = arith.constant 0 : index
    %c0_2 = arith.constant 0 : index
    %1 = vector.load %arg2[%c0_1, %c0_2] : memref<32x8xf32, #tpu.memory_space<vmem>>, vector<32x8xf32>
    %cst = arith.constant dense<0.000000e+00> : vector<96x8xf32>
    %2 = tpu.matmul %0, %1, %cst {dimension_numbers = #tpu.dot_dimension_numbers<[1], [0], [0], [1], [0, 0, 1, 1], [], []>} : vector<96x32xf32>, vector<32x8xf32>, vector<96x8xf32> -> vector<96x8xf32>
    %c0_3 = arith.constant 0 : index
    %c0_4 = arith.constant 0 : index
    %3 = vector.load %arg3[%c0_3, %c0_4] : memref<1x8xf32, #tpu.memory_space<vmem>>, vector<1x8xf32>
    %4 = vector.broadcast %3 : vector<1x8xf32> to vector<96x8xf32>
    %5 = arith.addf %2, %4 : vector<96x8xf32>
    %cst_5 = arith.constant 0.000000e+00 : f32
    %6 = vector.broadcast %cst_5 : f32 to vector<96x8xf32>
    %7 = arith.maximumf %5, %6 : vector<96x8xf32>
    %c0_6 = arith.constant 0 : index
    %c0_7 = arith.constant 0 : index
    %8 = vector.load %arg4[%c0_6, %c0_7] : memref<8x32xf32, #tpu.memory_space<vmem>>, vector<8x32xf32>
    %cst_8 = arith.constant dense<0.000000e+00> : vector<96x32xf32>
    %9 = tpu.matmul %7, %8, %cst_8 {dimension_numbers = #tpu.dot_dimension_numbers<[1], [0], [0], [1], [0, 0, 1, 1], [], []>} : vector<96x8xf32>, vector<8x32xf32>, vector<96x32xf32> -> vector<96x32xf32>
    %c0_9 = arith.constant 0 : index
    %c0_10 = arith.constant 0 : index
    %10 = vector.load %arg5[%c0_9, %c0_10] : memref<1x32xf32, #tpu.memory_space<vmem>>, vector<1x32xf32>
    %11 = vector.broadcast %10 : vector<1x32xf32> to vector<96x32xf32>
    %12 = arith.addf %9, %11 : vector<96x32xf32>
    %13 = arith.negf %12 : vector<96x32xf32>
    %14 = math.exp %13 : vector<96x32xf32>
    %cst_11 = arith.constant 1.000000e+00 : f32
    %15 = vector.broadcast %cst_11 : f32 to vector<96x32xf32>
    %16 = arith.addf %15, %14 : vector<96x32xf32>
    %17 = arith.divf %15, %16 : vector<96x32xf32>
    %18 = arith.mulf %0, %17 : vector<96x32xf32>
    %c0_12 = arith.constant 0 : index
    %c0_13 = arith.constant 0 : index
    %19 = vector.load %arg6[%c0_12, %c0_13] : memref<96x32xf32, #tpu.memory_space<vmem>>, vector<96x32xf32>
    tpu.vector_store %arg6[%c0_12, %c0_13], %18 {strides = array<i32>} : memref<96x32xf32, #tpu.memory_space<vmem>>, vector<96x32xf32>,
    return
  }
  func.func @transform_0(%arg0: i32) -> (i32, i32) {
    %c0_i32 = arith.constant 0 : i32
    %c0_i32_0 = arith.constant 0 : i32
    return %arg0, %c0_i32 : i32, i32
  }
  func.func @transform_1(%arg0: i32) -> (i32, i32) {
    %c0_i32 = arith.constant 0 : i32
    %c0_i32_0 = arith.constant 0 : i32
    %c0_i32_1 = arith.constant 0 : i32
    return %c0_i32, %c0_i32_0 : i32, i32
  }
  func.func @transform_2(%arg0: i32) -> (i32, i32) {
    %c0_i32 = arith.constant 0 : i32
    %c0_i32_0 = arith.constant 0 : i32
    %c0_i32_1 = arith.constant 0 : i32
    return %c0_i32, %c0_i32_0 : i32, i32
  }
  func.func @transform_3(%arg0: i32) -> (i32, i32) {
    %c0_i32 = arith.constant 0 : i32
    %c0_i32_0 = arith.constant 0 : i32
    %c0_i32_1 = arith.constant 0 : i32
    return %c0_i32, %c0_i32_0 : i32, i32
  }
  func.func @transform_4(%arg0: i32) -> (i32, i32) {
    %c0_i32 = arith.constant 0 : i32
    %c0_i32_0 = arith.constant 0 : i32
    %c0_i32_1 = arith.constant 0 : i32
    return %c0_i32, %c0_i32_0 : i32, i32
  }
  func.func @transform_5(%arg0: i32) -> (i32, i32) {
    %c0_i32 = arith.constant 0 : i32
    %c0_i32_0 = arith.constant 0 : i32
    return %arg0, %c0_i32 : i32, i32
  }
}

module attributes {stable_mosaic.version = 11 : i64} {
  func.func @attention_gate_kernel(%arg0: i32, %arg1: memref<96x32xf32, #tpu.memory_space<vmem>>, %arg2: memref<32x8xf32, #tpu.memory_space<vmem>>, %arg3: memref<1x8xf32, #tpu.memory_space<vmem>>, %arg4: memref<8x32xf32, #tpu.memory_space<vmem>>, %arg5: memref<1x32xf32, #tpu.memory_space<vmem>>, %arg6: memref<96x32xf32, #tpu.memory_space<vmem>>) attributes {dimension_semantics = [#tpu.dimension_semantics<parallel>], iteration_bounds = array<i64: 2>, scalar_prefetch = 0 : i64, scratch_operands = 0 : i64, tpu.core_type = #tpu.core_type<tc>, window_params = [{transform_indices = @transform_0, window_bounds = array<i64: 96, 32>}, {pipeline_mode = #tpu.pipeline_mode<synchronous>, transform_indices = @transform_1, window_bounds = array<i64: 32, 8>}, {pipeline_mode = #tpu.pipeline_mode<synchronous>, transform_indices = @transform_2, window_bounds = array<i64: 1, 8>}, {pipeline_mode = #tpu.pipeline_mode<synchronous>, transform_indices = @transform_3, window_bounds = array<i64: 8, 32>}, {pipeline_mode = #tpu.pipeline_mode<synchronous>, transform_indices = @transform_4, window_bounds = array<i64: 1, 32>}, {transform_indices = @transform_5, window_bounds = array<i64: 96, 32>}]} {
    %c0 = arith.constant 0 : index
    %c0_0 = arith.constant 0 : index
    %0 = vector.load %arg1[%c0, %c0_0] : memref<96x32xf32, #tpu.memory_space<vmem>>, vector<96x32xf32>
    %c0_1 = arith.constant 0 : index
    %c0_2 = arith.constant 0 : index
    %1 = vector.load %arg2[%c0_1, %c0_2] : memref<32x8xf32, #tpu.memory_space<vmem>>, vector<32x8xf32>
    %cst = arith.constant dense<0.000000e+00> : vector<96x8xf32>
    %2 = tpu.matmul %0, %1, %cst {dimension_numbers = #tpu.dot_dimension_numbers<[1], [0], [0], [1], [0, 0, 1, 1], [], []>} : vector<96x32xf32>, vector<32x8xf32>, vector<96x8xf32> -> vector<96x8xf32>
    %c0_3 = arith.constant 0 : index
    %c0_4 = arith.constant 0 : index
    %3 = vector.load %arg3[%c0_3, %c0_4] : memref<1x8xf32, #tpu.memory_space<vmem>>, vector<1x8xf32>
    %4 = vector.broadcast %3 : vector<1x8xf32> to vector<96x8xf32>
    %5 = arith.addf %2, %4 : vector<96x8xf32>
    %cst_5 = arith.constant 0.000000e+00 : f32
    %6 = vector.broadcast %cst_5 : f32 to vector<96x8xf32>
    %7 = arith.maximumf %5, %6 : vector<96x8xf32>
    %c0_6 = arith.constant 0 : index
    %c0_7 = arith.constant 0 : index
    %8 = vector.load %arg4[%c0_6, %c0_7] : memref<8x32xf32, #tpu.memory_space<vmem>>, vector<8x32xf32>
    %cst_8 = arith.constant dense<0.000000e+00> : vector<96x32xf32>
    %9 = tpu.matmul %7, %8, %cst_8 {dimension_numbers = #tpu.dot_dimension_numbers<[1], [0], [0], [1], [0, 0, 1, 1], [], []>} : vector<96x8xf32>, vector<8x32xf32>, vector<96x32xf32> -> vector<96x32xf32>
    %c0_9 = arith.constant 0 : index
    %c0_10 = arith.constant 0 : index
    %10 = vector.load %arg5[%c0_9, %c0_10] : memref<1x32xf32, #tpu.memory_space<vmem>>, vector<1x32xf32>
    %11 = vector.broadcast %10 : vector<1x32xf32> to vector<96x32xf32>
    %12 = arith.addf %9, %11 : vector<96x32xf32>
    %13 = arith.negf %12 : vector<96x32xf32>
    %14 = math.exp %13 : vector<96x32xf32>
    %cst_11 = arith.constant 1.000000e+00 : f32
    %15 = vector.broadcast %cst_11 : f32 to vector<96x32xf32>
    %16 = arith.addf %15, %14 : vector<96x32xf32>
    %17 = arith.divf %15, %16 : vector<96x32xf32>
    %18 = arith.mulf %0, %17 : vector<96x32xf32>
    %c0_12 = arith.constant 0 : index
    %c0_13 = arith.constant 0 : index
    %19 = vector.load %arg6[%c0_12, %c0_13] : memref<96x32xf32, #tpu.memory_space<vmem>>, vector<96x32xf32>
    tpu.vector_store %arg6[%c0_12, %c0_13], %18 {strides = array<i32>} : memref<96x32xf32, #tpu.memory_space<vmem>>, vector<96x32xf32>,
    return
  }
  func.func @transform_0(%arg0: i32) -> (i32, i32) {
    %c0_i32 = arith.constant 0 : i32
    %c0_i32_0 = arith.constant 0 : i32
    return %arg0, %c0_i32 : i32, i32
  }
  func.func @transform_1(%arg0: i32) -> (i32, i32) {
    %c0_i32 = arith.constant 0 : i32
    %c0_i32_0 = arith.constant 0 : i32
    %c0_i32_1 = arith.constant 0 : i32
    return %c0_i32, %c0_i32_0 : i32, i32
  }
  func.func @transform_2(%arg0: i32) -> (i32, i32) {
    %c0_i32 = arith.constant 0 : i32
    %c0_i32_0 = arith.constant 0 : i32
    %c0_i32_1 = arith.constant 0 : i32
    return %c0_i32, %c0_i32_0 : i32, i32
  }
  func.func @transform_3(%arg0: i32) -> (i32, i32) {
    %c0_i32 = arith.constant 0 : i32
    %c0_i32_0 = arith.constant 0 : i32
    %c0_i32_1 = arith.constant 0 : i32
    return %c0_i32, %c0_i32_0 : i32, i32
  }
  func.func @transform_4(%arg0: i32) -> (i32, i32) {
    %c0_i32 = arith.constant 0 : i32
    %c0_i32_0 = arith.constant 0 : i32
    %c0_i32_1 = arith.constant 0 : i32
    return %c0_i32, %c0_i32_0 : i32, i32
  }
  func.func @transform_5(%arg0: i32) -> (i32, i32) {
    %c0_i32 = arith.constant 0 : i32
    %c0_i32_0 = arith.constant 0 : i32
    return %arg0, %c0_i32 : i32, i32
  }
}

</mosaic_0001>

<bundles_post_ra>
// kernel: tpu_custom_call.1
= control target key start
LH: loop header
LB: loop body
LE: loop exit
PB: predicated region body
PF: predicated region fallthrough
CT: control target
= control target key end

     0   :  { %s963_s18 = smov 0   ;;  %s1106_s0 = inlined_call_operand.vmem [shape: f32[192,32], index: 0, kind: input, shape index: {}]   ;;  %s1107_s1 = inlined_call_operand.vmem [shape: f32[32,8], index: 1, kind: input, shape index: {}]   ;;  %s1108_s2 = inlined_call_operand.vmem [shape: f32[1,8], index: 2, kind: input, shape index: {}]   ;;  %s1109_s3 = inlined_call_operand.vmem [shape: f32[8,32], index: 3, kind: input, shape index: {}]   ;;  %s1110_s4 = inlined_call_operand.vmem [shape: f32[1,32], index: 4, kind: input, shape index: {}]   ;;  %s1111_s5 = inlined_call_operand.vmem [shape: f32[192,32], index: 5, kind: output, shape index: {}]  }
   0x1 LB: > { %s747_s19 = sadd.s32 4294967295, %s931_s18   ;;  %p751_p0 = scmp.ge.s32.totalorder %s931_s18, 1  ;;  %s931_s18 = sphi %s963_s18, %s15_s18  }
   0x2   : > { %p188_p1 = scmp.lt.s32.totalorder %s931_s18, 3 }
   0x4   : > { %p189_p2 = pnand %p751_p0, %p188_p1 }
   0x5   : > { %s216_s24 = smul.u32 (!%p189_p2), 12, %s747_s19 }
   0x6   : > { %192 = sbr.rel (%p189_p2) target bundleno = 473 (0x1d9), region = 40 }
   0x7   : > { %p217_p3 = scmp.lt.s32.totalorder (!%p189_p2), %s216_s24, 23 }
   0xb   : > { %v243_v0 = vld [vmem:[%s1107_s1 + $0x18] sm:$0xff]  ;;  %v242_v1 = vld [vmem:[%s1107_s1 + $0x10] sm:$0xff]  ;;  %v241_v2 = vld [vmem:[%s1107_s1 + $0x8] sm:$0xff]  ;;  %s1113_s24 = smov (!%p217_p3, %s216_s24), 23  ;;  %vm251_vm0 = vcmask 261120   ;;  %vm433_vm1 = vcmask 64512  }
   0xc   : > { %823 = vmatprep.subr.mxu0 %v243_v0  ;;  %v240_v3 = vld [vmem:[%s1107_s1] sm:$0xff]  ;;  %s752_s29 = sshll.u32 %s1113_s24, 3 }
   0xd   : > { %824 = vmatpush3.msra.mxu0 %v243_v0  ;;  %s220_s7 = scalar_lea.vmem %s1106_s0, %s752_s29  ;;  %v425_v16 = vld [vmem:[%s1109_s3] sm:$0xff]  ;;  %s1065_s16 = scalar_lea.vmem %s1111_s5, %s752_s29 }
   0xe   : > { %825 = vmatprep.subr.mxu0 %v242_v1  ;;  %v991_v4 = vld [vmem:[%s220_s7] sm:$0xff]  ;;  %v993_v5 = vld [vmem:[%s220_s7 + $0x8] sm:$0xff]  ;;  %v995_v6 = vld [vmem:[%s220_s7 + $0x10] sm:$0xff]  ;;  %849 = vmatprep.subr.mxu1 %v425_v16 }
   0xf   : > { %826 = vmatpush3.msra.mxu0 %v242_v1  ;;  %831 = vmatprep.mubr.msk.f32.mxu0 %vm251_vm0, %v991_v4  ;;  %v1003_v7 = vld [vmem:[%s220_s7 + $0x18] sm:$0xff]  ;;  %v1005_v8 = vld [vmem:[%s220_s7 + $0x20] sm:$0xff]  ;;  %v1011_v9 = vld [vmem:[%s220_s7 + $0x28] sm:$0xff] }
  0x10   : > { %827 = vmatprep.subr.mxu0 %v241_v2  ;;  %v1013_v10 = vld [vmem:[%s220_s7 + $0x30] sm:$0xff]  ;;  %v1019_v11 = vld [vmem:[%s220_s7 + $0x38] sm:$0xff]  ;;  %v1021_v12 = vld [vmem:[%s220_s7 + $0x40] sm:$0xff]  ;;  %850 = vmatpush3.msra.mxu1 %v425_v16 }
  0x11   : > { %828 = vmatpush3.msra.mxu0 %v241_v2  ;;  %v1027_v13 = vld [vmem:[%s220_s7 + $0x48] sm:$0xff]  ;;  %v1029_v14 = vld [vmem:[%s220_s7 + $0x50] sm:$0xff]  ;;  %v1035_v15 = vld [vmem:[%s220_s7 + $0x58] sm:$0xff] }
  0x12   : > { %829 = vmatprep.subr.mxu0 %v240_v3  ;;  %v754_v17 = vld [vmem:[%s1108_s2] ss:$0 sm:$0xff] }
  0x13   : > { %830 = vmatpush3.msra.mxu0 %v240_v3  ;;  %v767_v54 = vld [vmem:[%s1110_s4] ss:$0 sm:$0xff] }
  0x14   : > { %832 = vmatmul.mubr.msk.f32.vlgmr.msra.gmra.mxu0 %vm251_vm0, %v993_v5 }
  0x15   : > { %834 = vmatprep.mubr.msk.f32.mxu0 %vm251_vm0, %v995_v6 }
  0x18   : > { %835 = vmatmul.mubr.msk.f32.gmra.mxu0 %vm251_vm0, %v1003_v7 }
  0x19   : > { %837 = vmatprep.mubr.msk.f32.mxu0 %vm251_vm0, %v1005_v8 }
  0x1c   : > { %838 = vmatmul.mubr.msk.f32.gmra.mxu0 %vm251_vm0, %v1011_v9 }
  0x1d   : > { %840 = vmatprep.mubr.msk.f32.mxu0 %vm251_vm0, %v1013_v10 }
  0x20   : > { %841 = vmatmul.mubr.msk.f32.gmra.mxu0 %vm251_vm0, %v1019_v11 }
  0x21   : > { %843 = vmatprep.mubr.msk.f32.mxu0 %vm251_vm0, %v1021_v12 }
  0x24   : > { %844 = vmatmul.mubr.msk.f32.gmra.mxu0 %vm251_vm0, %v1027_v13 }
  0x25   : > { %846 = vmatprep.mubr.msk.f32.mxu0 %vm251_vm0, %v1029_v14 }
  0x28   : > { %847 = vmatmul.mubr.msk.f32.gmra.mxu0 %vm251_vm0, %v1035_v15 }
  0xd4   : > { %v833_v18 = vpop.f32.mrf.mxu0 }
  0xd5   : > { %v360_v19 = vadd.f32 %v833_v18, %v754_v17 }
  0xd6   : > { %v354_v20 = vpop.f32.mrf.mxu0 }
  0xd7   : > { %v355_v21 = vadd.f32 %v754_v17, %v354_v20  ;;  %v414_v24 = vmax.f32 %v360_v19, 0.0 }
  0xd8   : > { %v836_v22 = vpop.f32.mrf.mxu0 }
  0xd9   : > { %v413_v23 = vmax.f32 %v355_v21, 0.0  ;;  %v370_v25 = vadd.f32 %v836_v22, %v754_v17 }
  0xda   : > { %v364_v26 = vpop.f32.mrf.mxu0 }
  0xdb   : > { %v365_v27 = vadd.f32 %v754_v17, %v364_v26  ;;  %851 = vmatprep.mubr.msk.f32.mxu1 %vm433_vm1, %v413_v23  ;;  %v416_v30 = vmax.f32 %v370_v25, 0.0 }
  0xdc   : > { %v839_v28 = vpop.f32.mrf.mxu0  ;;  %852 = vmatmul.mubr.msk.f32.vlgmr.msra.gmra.mxu1 %vm433_vm1, %v414_v24 }
  0xdd   : > { %v415_v29 = vmax.f32 %v365_v27, 0.0  ;;  %v380_v31 = vadd.f32 %v839_v28, %v754_v17 }
  0xde   : > { %v374_v32 = vpop.f32.mrf.mxu0 }
  0xdf   : > { %v375_v33 = vadd.f32 %v754_v17, %v374_v32  ;;  %854 = vmatprep.mubr.msk.f32.mxu1 %vm433_vm1, %v415_v29  ;;  %v418_v36 = vmax.f32 %v380_v31, 0.0 }
  0xe0   : > { %v842_v34 = vpop.f32.mrf.mxu0  ;;  %855 = vmatmul.mubr.msk.f32.gmra.mxu1 %vm433_vm1, %v416_v30 }
  0xe1   : > { %v417_v35 = vmax.f32 %v375_v33, 0.0  ;;  %v390_v37 = vadd.f32 %v842_v34, %v754_v17 }
  0xe2   : > { %v384_v38 = vpop.f32.mrf.mxu0 }
  0xe3   : > { %v385_v39 = vadd.f32 %v754_v17, %v384_v38  ;;  %857 = vmatprep.mubr.msk.f32.mxu1 %vm433_vm1, %v417_v35  ;;  %v420_v42 = vmax.f32 %v390_v37, 0.0 }
  0xe4   : > { %v845_v40 = vpop.f32.mrf.mxu0  ;;  %858 = vmatmul.mubr.msk.f32.gmra.mxu1 %vm433_vm1, %v418_v36 }
  0xe5   : > { %v419_v41 = vmax.f32 %v385_v39, 0.0  ;;  %v400_v43 = vadd.f32 %v845_v40, %v754_v17 }
  0xe6   : > { %v394_v44 = vpop.f32.mrf.mxu0 }
  0xe7   : > { %v395_v45 = vadd.f32 %v754_v17, %v394_v44  ;;  %860 = vmatprep.mubr.msk.f32.mxu1 %vm433_vm1, %v419_v41  ;;  %v422_v48 = vmax.f32 %v400_v43, 0.0 }
  0xe8   : > { %v848_v46 = vpop.f32.mrf.mxu0  ;;  %861 = vmatmul.mubr.msk.f32.gmra.mxu1 %vm433_vm1, %v420_v42 }
  0xe9   : > { %v421_v47 = vmax.f32 %v395_v45, 0.0  ;;  %v410_v49 = vadd.f32 %v848_v46, %v754_v17 }
  0xea   : > { %v404_v50 = vpop.f32.mrf.mxu0 }
  0xeb   : > { %v405_v51 = vadd.f32 %v754_v17, %v404_v50  ;;  %863 = vmatprep.mubr.msk.f32.mxu1 %vm433_vm1, %v421_v47  ;;  %v424_v53 = vmax.f32 %v410_v49, 0.0 }
  0xec   : > { %864 = vmatmul.mubr.msk.f32.gmra.mxu1 %vm433_vm1, %v422_v48 }
  0xed   : > { %v423_v52 = vmax.f32 %v405_v51, 0.0 }
  0xef   : > { %866 = vmatprep.mubr.msk.f32.mxu1 %vm433_vm1, %v423_v52 }
  0xf0   : > { %867 = vmatmul.mubr.msk.f32.gmra.mxu1 %vm433_vm1, %v424_v53 }
 0x19c   : > { %v853_v55 = vpop.f32.mrf.mxu1 }
 0x19d   : > { %v542_v56 = vadd.f32 %v853_v55, %v767_v54 }
 0x19e   : > { %v536_v57 = vpop.f32.mrf.mxu1 }
 0x19f   : > { %v781_v58 = vmul.f32 -1.442695, %v542_v56  ;;  %v537_v59 = vadd.f32 %v767_v54, %v536_v57 }
 0x1a0   : > { %v856_v60 = vpop.f32.mrf.mxu1 }
 0x1a1   : > { %877 = vpow2.f32 %v781_v58  ;;  %v780_v61 = vmul.f32 -1.442695, %v537_v59  ;;  %v552_v62 = vadd.f32 %v856_v60, %v767_v54 }
 0x1a2   : > { %v546_v63 = vpop.f32.mrf.mxu1 }
 0x1a3   : > { %879 = vpow2.f32 %v780_v61  ;;  %v783_v0 = vmul.f32 -1.442695, %v552_v62  ;;  %v547_v1 = vadd.f32 %v767_v54, %v546_v63 }
 0x1a4   : > { %v859_v2 = vpop.f32.mrf.mxu1 }
 0x1a5   : > { %881 = vpow2.f32 %v783_v0  ;;  %v782_v3 = vmul.f32 -1.442695, %v547_v1  ;;  %v562_v16 = vadd.f32 %v859_v2, %v767_v54 }
 0x1a6   : > { %v556_v17 = vpop.f32.mrf.mxu1 }
 0x1a7   : > { %883 = vpow2.f32 %v782_v3  ;;  %v785_v18 = vmul.f32 -1.442695, %v562_v16  ;;  %v557_v19 = vadd.f32 %v767_v54, %v556_v17 }
 0x1a8   : > { %v862_v20 = vpop.f32.mrf.mxu1 }
 0x1a9   : > { %885 = vpow2.f32 %v785_v18  ;;  %v784_v21 = vmul.f32 -1.442695, %v557_v19  ;;  %v572_v22 = vadd.f32 %v862_v20, %v767_v54 }
 0x1aa   : > { %v566_v23 = vpop.f32.mrf.mxu1 }
 0x1ab   : > { %887 = vpow2.f32 %v784_v21  ;;  %v787_v24 = vmul.f32 -1.442695, %v572_v22  ;;  %v567_v25 = vadd.f32 %v767_v54, %v566_v23 }
 0x1ac   : > { %v865_v26 = vpop.f32.mrf.mxu1 }
 0x1ad   : > { %889 = vpow2.f32 %v787_v24  ;;  %v786_v27 = vmul.f32 -1.442695, %v567_v25  ;;  %v582_v28 = vadd.f32 %v865_v26, %v767_v54 }
 0x1ae   : > { %v878_v29 = vpop.eup %877  ;;  %v576_v30 = vpop.f32.mrf.mxu1 }
 0x1af   : > { %v632_v31 = vadd.f32 1.0, %v878_v29  ;;  %891 = vpow2.f32 %v786_v27  ;;  %v789_v32 = vmul.f32 -1.442695, %v582_v28  ;;  %v577_v33 = vadd.f32 %v767_v54, %v576_v30 }
 0x1b0   : > { %v880_v34 = vpop.eup %879  ;;  %v868_v35 = vpop.f32.mrf.mxu1 }
 0x1b1   : > { %893 = vrcp.f32 %v632_v31  ;;  %v631_v36 = vadd.f32 1.0, %v880_v34  ;;  %v788_v37 = vmul.f32 -1.442695, %v577_v33  ;;  %v592_v38 = vadd.f32 %v868_v35, %v767_v54 }
 0x1b2   : > { %v882_v39 = vpop.eup %881  ;;  %895 = vpow2.f32 %v789_v32  ;;  %v586_v40 = vpop.f32.mrf.mxu1 }
 0x1b3   : > { %897 = vrcp.f32 %v631_v36  ;;  %v634_v41 = vadd.f32 1.0, %v882_v39  ;;  %v791_v42 = vmul.f32 -1.442695, %v592_v38  ;;  %v587_v43 = vadd.f32 %v767_v54, %v586_v40 }
 0x1b4   : > { %v884_v44 = vpop.eup %883  ;;  %899 = vpow2.f32 %v788_v37 }
 0x1b5   : > { %901 = vrcp.f32 %v634_v41  ;;  %v633_v45 = vadd.f32 1.0, %v884_v44  ;;  %v790_v46 = vmul.f32 -1.442695, %v587_v43 }
 0x1b6   : > { %v886_v47 = vpop.eup %885  ;;  %903 = vpow2.f32 %v791_v42 }
 0x1b7   : > { %905 = vrcp.f32 %v633_v45  ;;  %v636_v48 = vadd.f32 1.0, %v886_v47 }
 0x1b8   : > { %v888_v49 = vpop.eup %887  ;;  %907 = vpow2.f32 %v790_v46 }
 0x1b9   : > { %909 = vrcp.f32 %v636_v48  ;;  %v635_v50 = vadd.f32 1.0, %v888_v49 }
 0x1ba   : > { %v890_v51 = vpop.eup %889 }
 0x1bb   : > { %911 = vrcp.f32 %v635_v50  ;;  %v638_v52 = vadd.f32 1.0, %v890_v51 }
 0x1bc   : > { %v892_v53 = vpop.eup %891 }
 0x1bd   : > { %913 = vrcp.f32 %v638_v52  ;;  %v637_v54 = vadd.f32 1.0, %v892_v53 }
 0x1be   : > { %v894_v55 = vpop.eup %893 }
 0x1bf   : > { %v896_v56 = vpop.eup %895  ;;  %v668_v57 = vmul.f32 %v894_v55, %v993_v5  ;;  %915 = vrcp.f32 %v637_v54 }
 0x1c0   : > { %v898_v58 = vpop.eup %897  ;;  %v640_v59 = vadd.f32 1.0, %v896_v56 }
 0x1c1   : > { %v900_v60 = vpop.eup %899  ;;  %680 = vst.msk [vmem:[%s1065_s16 + $0x8] sm:$0xff] %vm251_vm0, %v668_v57  ;;  %v667_v61 = vmul.f32 %v898_v58, %v991_v4 }
 0x1c2   : > { %v902_v62 = vpop.eup %901  ;;  %917 = vrcp.f32 %v640_v59  ;;  %v639_v63 = vadd.f32 1.0, %v900_v60 }
 0x1c3   : > { %v904_v0 = vpop.eup %903  ;;  %679 = vst.msk [vmem:[%s1065_s16] sm:$0xff] %vm251_vm0, %v667_v61  ;;  %v670_v1 = vmul.f32 %v902_v62, %v1003_v7 }
 0x1c4   : > { %v906_v5 = vpop.eup %905  ;;  %919 = vrcp.f32 %v639_v63  ;;  %v642_v2 = vadd.f32 1.0, %v904_v0 }
 0x1c5   : > { %v908_v3 = vpop.eup %907  ;;  %682 = vst.msk [vmem:[%s1065_s16 + $0x18] sm:$0xff] %vm251_vm0, %v670_v1  ;;  %v669_v4 = vmul.f32 %v906_v5, %v995_v6 }
 0x1c6   : > { %v910_v16 = vpop.eup %909  ;;  %921 = vrcp.f32 %v642_v2  ;;  %v641_v17 = vadd.f32 1.0, %v908_v3 }
 0x1c7   : > { %681 = vst.msk [vmem:[%s1065_s16 + $0x10] sm:$0xff] %vm251_vm0, %v669_v4  ;;  %v672_v18 = vmul.f32 %v910_v16, %v1011_v9 }
 0x1c8   : > { %v912_v7 = vpop.eup %911  ;;  %923 = vrcp.f32 %v641_v17 }
 0x1c9   : > { %684 = vst.msk [vmem:[%s1065_s16 + $0x28] sm:$0xff] %vm251_vm0, %v672_v18  ;;  %v671_v19 = vmul.f32 %v912_v7, %v1005_v8 }
 0x1ca   : > { %v914_v20 = vpop.eup %913 }
 0x1cb   : > { %683 = vst.msk [vmem:[%s1065_s16 + $0x20] sm:$0xff] %vm251_vm0, %v671_v19  ;;  %v674_v6 = vmul.f32 %v914_v20, %v1019_v11 }
 0x1cc   : > { %v916_v21 = vpop.eup %915 }
 0x1cd   : > { %686 = vst.msk [vmem:[%s1065_s16 + $0x38] sm:$0xff] %vm251_vm0, %v674_v6  ;;  %v673_v22 = vmul.f32 %v916_v21, %v1013_v10 }
 0x1cf   : > { %v918_v9 = vpop.eup %917  ;;  %685 = vst.msk [vmem:[%s1065_s16 + $0x30] sm:$0xff] %vm251_vm0, %v673_v22 }
 0x1d0   : > { %v676_v23 = vmul.f32 %v918_v9, %v1027_v13 }
 0x1d1   : > { %v920_v24 = vpop.eup %919 }
 0x1d2   : > { %688 = vst.msk [vmem:[%s1065_s16 + $0x48] sm:$0xff] %vm251_vm0, %v676_v23  ;;  %v675_v8 = vmul.f32 %v920_v24, %v1021_v12 }
 0x1d3   : > { %v922_v25 = vpop.eup %921 }
 0x1d4   : > { %687 = vst.msk [vmem:[%s1065_s16 + $0x40] sm:$0xff] %vm251_vm0, %v675_v8  ;;  %v678_v11 = vmul.f32 %v922_v25, %v1035_v15 }
 0x1d5   : > { %v924_v26 = vpop.eup %923 }
 0x1d6   : > { %690 = vst.msk [vmem:[%s1065_s16 + $0x58] sm:$0xff] %vm251_vm0, %v678_v11  ;;  %v677_v10 = vmul.f32 %v924_v26, %v1029_v14 }
 0x1d8   : > { %689 = vst.msk [vmem:[%s1065_s16 + $0x50] sm:$0xff] %vm251_vm0, %v677_v10 }
 0x1d9 PF: > { %s15_s18 = sadd.s32 1, %s931_s18  }
 0x1da   : > { %p12_p4 = scmp.ge.s32.totalorder %s15_s18, 4  }
 0x1dc   :  { %14 = sbr.rel (!%p12_p4) target bundleno = 1 (0x1), region = 70 }

// kernel: tpu_custom_call.1
= control target key start
LH: loop header
LB: loop body
LE: loop exit
PB: predicated region body
PF: predicated region fallthrough
CT: control target
= control target key end

     0   :  { %s963_s18 = smov 0   ;;  %s1106_s0 = inlined_call_operand.vmem [shape: f32[192,32], index: 0, kind: input, shape index: {}]   ;;  %s1107_s1 = inlined_call_operand.vmem [shape: f32[32,8], index: 1, kind: input, shape index: {}]   ;;  %s1108_s2 = inlined_call_operand.vmem [shape: f32[1,8], index: 2, kind: input, shape index: {}]   ;;  %s1109_s3 = inlined_call_operand.vmem [shape: f32[8,32], index: 3, kind: input, shape index: {}]   ;;  %s1110_s4 = inlined_call_operand.vmem [shape: f32[1,32], index: 4, kind: input, shape index: {}]   ;;  %s1111_s5 = inlined_call_operand.vmem [shape: f32[192,32], index: 5, kind: output, shape index: {}]  }
   0x1 LB: > { %s747_s19 = sadd.s32 4294967295, %s931_s18   ;;  %p751_p0 = scmp.ge.s32.totalorder %s931_s18, 1  ;;  %s931_s18 = sphi %s963_s18, %s15_s18  }
   0x2   : > { %p188_p1 = scmp.lt.s32.totalorder %s931_s18, 3 }
   0x4   : > { %p189_p2 = pnand %p751_p0, %p188_p1 }
   0x5   : > { %s216_s24 = smul.u32 (!%p189_p2), 12, %s747_s19 }
   0x6   : > { %192 = sbr.rel (%p189_p2) target bundleno = 473 (0x1d9), region = 40 }
   0x7   : > { %p217_p3 = scmp.lt.s32.totalorder (!%p189_p2), %s216_s24, 23 }
   0xb   : > { %v243_v0 = vld [vmem:[%s1107_s1 + $0x18] sm:$0xff]  ;;  %v242_v1 = vld [vmem:[%s1107_s1 + $0x10] sm:$0xff]  ;;  %v241_v2 = vld [vmem:[%s1107_s1 + $0x8] sm:$0xff]  ;;  %s1113_s24 = smov (!%p217_p3, %s216_s24), 23  ;;  %vm251_vm0 = vcmask 261120   ;;  %vm433_vm1 = vcmask 64512  }
   0xc   : > { %823 = vmatprep.subr.mxu0 %v243_v0  ;;  %v240_v3 = vld [vmem:[%s1107_s1] sm:$0xff]  ;;  %s752_s29 = sshll.u32 %s1113_s24, 3 }
   0xd   : > { %824 = vmatpush3.msra.mxu0 %v243_v0  ;;  %s220_s7 = scalar_lea.vmem %s1106_s0, %s752_s29  ;;  %v425_v16 = vld [vmem:[%s1109_s3] sm:$0xff]  ;;  %s1065_s16 = scalar_lea.vmem %s1111_s5, %s752_s29 }
   0xe   : > { %825 = vmatprep.subr.mxu0 %v242_v1  ;;  %v991_v4 = vld [vmem:[%s220_s7] sm:$0xff]  ;;  %v993_v5 = vld [vmem:[%s220_s7 + $0x8] sm:$0xff]  ;;  %v995_v6 = vld [vmem:[%s220_s7 + $0x10] sm:$0xff]  ;;  %849 = vmatprep.subr.mxu1 %v425_v16 }
   0xf   : > { %826 = vmatpush3.msra.mxu0 %v242_v1  ;;  %831 = vmatprep.mubr.msk.f32.mxu0 %vm251_vm0, %v991_v4  ;;  %v1003_v7 = vld [vmem:[%s220_s7 + $0x18] sm:$0xff]  ;;  %v1005_v8 = vld [vmem:[%s220_s7 + $0x20] sm:$0xff]  ;;  %v1011_v9 = vld [vmem:[%s220_s7 + $0x28] sm:$0xff] }
  0x10   : > { %827 = vmatprep.subr.mxu0 %v241_v2  ;;  %v1013_v10 = vld [vmem:[%s220_s7 + $0x30] sm:$0xff]  ;;  %v1019_v11 = vld [vmem:[%s220_s7 + $0x38] sm:$0xff]  ;;  %v1021_v12 = vld [vmem:[%s220_s7 + $0x40] sm:$0xff]  ;;  %850 = vmatpush3.msra.mxu1 %v425_v16 }
  0x11   : > { %828 = vmatpush3.msra.mxu0 %v241_v2  ;;  %v1027_v13 = vld [vmem:[%s220_s7 + $0x48] sm:$0xff]  ;;  %v1029_v14 = vld [vmem:[%s220_s7 + $0x50] sm:$0xff]  ;;  %v1035_v15 = vld [vmem:[%s220_s7 + $0x58] sm:$0xff] }
  0x12   : > { %829 = vmatprep.subr.mxu0 %v240_v3  ;;  %v754_v17 = vld [vmem:[%s1108_s2] ss:$0 sm:$0xff] }
  0x13   : > { %830 = vmatpush3.msra.mxu0 %v240_v3  ;;  %v767_v54 = vld [vmem:[%s1110_s4] ss:$0 sm:$0xff] }
  0x14   : > { %832 = vmatmul.mubr.msk.f32.vlgmr.msra.gmra.mxu0 %vm251_vm0, %v993_v5 }
  0x15   : > { %834 = vmatprep.mubr.msk.f32.mxu0 %vm251_vm0, %v995_v6 }
  0x18   : > { %835 = vmatmul.mubr.msk.f32.gmra.mxu0 %vm251_vm0, %v1003_v7 }
  0x19   : > { %837 = vmatprep.mubr.msk.f32.mxu0 %vm251_vm0, %v1005_v8 }
  0x1c   : > { %838 = vmatmul.mubr.msk.f32.gmra.mxu0 %vm251_vm0, %v1011_v9 }
  0x1d   : > { %840 = vmatprep.mubr.msk.f32.mxu0 %vm251_vm0, %v1013_v10 }
  0x20   : > { %841 = vmatmul.mubr.msk.f32.gmra.mxu0 %vm251_vm0, %v1019_v11 }
  0x21   : > { %843 = vmatprep.mubr.msk.f32.mxu0 %vm251_vm0, %v1021_v12 }
  0x24   : > { %844 = vmatmul.mubr.msk.f32.gmra.mxu0 %vm251_vm0, %v1027_v13 }
  0x25   : > { %846 = vmatprep.mubr.msk.f32.mxu0 %vm251_vm0, %v1029_v14 }
  0x28   : > { %847 = vmatmul.mubr.msk.f32.gmra.mxu0 %vm251_vm0, %v1035_v15 }
  0xd4   : > { %v833_v18 = vpop.f32.mrf.mxu0 }
  0xd5   : > { %v360_v19 = vadd.f32 %v833_v18, %v754_v17 }
  0xd6   : > { %v354_v20 = vpop.f32.mrf.mxu0 }
  0xd7   : > { %v355_v21 = vadd.f32 %v754_v17, %v354_v20  ;;  %v414_v24 = vmax.f32 %v360_v19, 0.0 }
  0xd8   : > { %v836_v22 = vpop.f32.mrf.mxu0 }
  0xd9   : > { %v413_v23 = vmax.f32 %v355_v21, 0.0  ;;  %v370_v25 = vadd.f32 %v836_v22, %v754_v17 }
  0xda   : > { %v364_v26 = vpop.f32.mrf.mxu0 }
  0xdb   : > { %v365_v27 = vadd.f32 %v754_v17, %v364_v26  ;;  %851 = vmatprep.mubr.msk.f32.mxu1 %vm433_vm1, %v413_v23  ;;  %v416_v30 = vmax.f32 %v370_v25, 0.0 }
  0xdc   : > { %v839_v28 = vpop.f32.mrf.mxu0  ;;  %852 = vmatmul.mubr.msk.f32.vlgmr.msra.gmra.mxu1 %vm433_vm1, %v414_v24 }
  0xdd   : > { %v415_v29 = vmax.f32 %v365_v27, 0.0  ;;  %v380_v31 = vadd.f32 %v839_v28, %v754_v17 }
  0xde   : > { %v374_v32 = vpop.f32.mrf.mxu0 }
  0xdf   : > { %v375_v33 = vadd.f32 %v754_v17, %v374_v32  ;;  %854 = vmatprep.mubr.msk.f32.mxu1 %vm433_vm1, %v415_v29  ;;  %v418_v36 = vmax.f32 %v380_v31, 0.0 }
  0xe0   : > { %v842_v34 = vpop.f32.mrf.mxu0  ;;  %855 = vmatmul.mubr.msk.f32.gmra.mxu1 %vm433_vm1, %v416_v30 }
  0xe1   : > { %v417_v35 = vmax.f32 %v375_v33, 0.0  ;;  %v390_v37 = vadd.f32 %v842_v34, %v754_v17 }
  0xe2   : > { %v384_v38 = vpop.f32.mrf.mxu0 }
  0xe3   : > { %v385_v39 = vadd.f32 %v754_v17, %v384_v38  ;;  %857 = vmatprep.mubr.msk.f32.mxu1 %vm433_vm1, %v417_v35  ;;  %v420_v42 = vmax.f32 %v390_v37, 0.0 }
  0xe4   : > { %v845_v40 = vpop.f32.mrf.mxu0  ;;  %858 = vmatmul.mubr.msk.f32.gmra.mxu1 %vm433_vm1, %v418_v36 }
  0xe5   : > { %v419_v41 = vmax.f32 %v385_v39, 0.0  ;;  %v400_v43 = vadd.f32 %v845_v40, %v754_v17 }
  0xe6   : > { %v394_v44 = vpop.f32.mrf.mxu0 }
  0xe7   : > { %v395_v45 = vadd.f32 %v754_v17, %v394_v44  ;;  %860 = vmatprep.mubr.msk.f32.mxu1 %vm433_vm1, %v419_v41  ;;  %v422_v48 = vmax.f32 %v400_v43, 0.0 }
  0xe8   : > { %v848_v46 = vpop.f32.mrf.mxu0  ;;  %861 = vmatmul.mubr.msk.f32.gmra.mxu1 %vm433_vm1, %v420_v42 }
  0xe9   : > { %v421_v47 = vmax.f32 %v395_v45, 0.0  ;;  %v410_v49 = vadd.f32 %v848_v46, %v754_v17 }
  0xea   : > { %v404_v50 = vpop.f32.mrf.mxu0 }
  0xeb   : > { %v405_v51 = vadd.f32 %v754_v17, %v404_v50  ;;  %863 = vmatprep.mubr.msk.f32.mxu1 %vm433_vm1, %v421_v47  ;;  %v424_v53 = vmax.f32 %v410_v49, 0.0 }
  0xec   : > { %864 = vmatmul.mubr.msk.f32.gmra.mxu1 %vm433_vm1, %v422_v48 }
  0xed   : > { %v423_v52 = vmax.f32 %v405_v51, 0.0 }
  0xef   : > { %866 = vmatprep.mubr.msk.f32.mxu1 %vm433_vm1, %v423_v52 }
  0xf0   : > { %867 = vmatmul.mubr.msk.f32.gmra.mxu1 %vm433_vm1, %v424_v53 }
 0x19c   : > { %v853_v55 = vpop.f32.mrf.mxu1 }
 0x19d   : > { %v542_v56 = vadd.f32 %v853_v55, %v767_v54 }
 0x19e   : > { %v536_v57 = vpop.f32.mrf.mxu1 }
 0x19f   : > { %v781_v58 = vmul.f32 -1.442695, %v542_v56  ;;  %v537_v59 = vadd.f32 %v767_v54, %v536_v57 }
 0x1a0   : > { %v856_v60 = vpop.f32.mrf.mxu1 }
 0x1a1   : > { %877 = vpow2.f32 %v781_v58  ;;  %v780_v61 = vmul.f32 -1.442695, %v537_v59  ;;  %v552_v62 = vadd.f32 %v856_v60, %v767_v54 }
 0x1a2   : > { %v546_v63 = vpop.f32.mrf.mxu1 }
 0x1a3   : > { %879 = vpow2.f32 %v780_v61  ;;  %v783_v0 = vmul.f32 -1.442695, %v552_v62  ;;  %v547_v1 = vadd.f32 %v767_v54, %v546_v63 }
 0x1a4   : > { %v859_v2 = vpop.f32.mrf.mxu1 }
 0x1a5   : > { %881 = vpow2.f32 %v783_v0  ;;  %v782_v3 = vmul.f32 -1.442695, %v547_v1  ;;  %v562_v16 = vadd.f32 %v859_v2, %v767_v54 }
 0x1a6   : > { %v556_v17 = vpop.f32.mrf.mxu1 }
 0x1a7   : > { %883 = vpow2.f32 %v782_v3  ;;  %v785_v18 = vmul.f32 -1.442695, %v562_v16  ;;  %v557_v19 = vadd.f32 %v767_v54, %v556_v17 }
 0x1a8   : > { %v862_v20 = vpop.f32.mrf.mxu1 }
 0x1a9   : > { %885 = vpow2.f32 %v785_v18  ;;  %v784_v21 = vmul.f32 -1.442695, %v557_v19  ;;  %v572_v22 = vadd.f32 %v862_v20, %v767_v54 }
 0x1aa   : > { %v566_v23 = vpop.f32.mrf.mxu1 }
 0x1ab   : > { %887 = vpow2.f32 %v784_v21  ;;  %v787_v24 = vmul.f32 -1.442695, %v572_v22  ;;  %v567_v25 = vadd.f32 %v767_v54, %v566_v23 }
 0x1ac   : > { %v865_v26 = vpop.f32.mrf.mxu1 }
 0x1ad   : > { %889 = vpow2.f32 %v787_v24  ;;  %v786_v27 = vmul.f32 -1.442695, %v567_v25  ;;  %v582_v28 = vadd.f32 %v865_v26, %v767_v54 }
 0x1ae   : > { %v878_v29 = vpop.eup %877  ;;  %v576_v30 = vpop.f32.mrf.mxu1 }
 0x1af   : > { %v632_v31 = vadd.f32 1.0, %v878_v29  ;;  %891 = vpow2.f32 %v786_v27  ;;  %v789_v32 = vmul.f32 -1.442695, %v582_v28  ;;  %v577_v33 = vadd.f32 %v767_v54, %v576_v30 }
 0x1b0   : > { %v880_v34 = vpop.eup %879  ;;  %v868_v35 = vpop.f32.mrf.mxu1 }
 0x1b1   : > { %893 = vrcp.f32 %v632_v31  ;;  %v631_v36 = vadd.f32 1.0, %v880_v34  ;;  %v788_v37 = vmul.f32 -1.442695, %v577_v33  ;;  %v592_v38 = vadd.f32 %v868_v35, %v767_v54 }
 0x1b2   : > { %v882_v39 = vpop.eup %881  ;;  %895 = vpow2.f32 %v789_v32  ;;  %v586_v40 = vpop.f32.mrf.mxu1 }
 0x1b3   : > { %897 = vrcp.f32 %v631_v36  ;;  %v634_v41 = vadd.f32 1.0, %v882_v39  ;;  %v791_v42 = vmul.f32 -1.442695, %v592_v38  ;;  %v587_v43 = vadd.f32 %v767_v54, %v586_v40 }
 0x1b4   : > { %v884_v44 = vpop.eup %883  ;;  %899 = vpow2.f32 %v788_v37 }
 0x1b5   : > { %901 = vrcp.f32 %v634_v41  ;;  %v633_v45 = vadd.f32 1.0, %v884_v44  ;;  %v790_v46 = vmul.f32 -1.442695, %v587_v43 }
 0x1b6   : > { %v886_v47 = vpop.eup %885  ;;  %903 = vpow2.f32 %v791_v42 }
 0x1b7   : > { %905 = vrcp.f32 %v633_v45  ;;  %v636_v48 = vadd.f32 1.0, %v886_v47 }
 0x1b8   : > { %v888_v49 = vpop.eup %887  ;;  %907 = vpow2.f32 %v790_v46 }
 0x1b9   : > { %909 = vrcp.f32 %v636_v48  ;;  %v635_v50 = vadd.f32 1.0, %v888_v49 }
 0x1ba   : > { %v890_v51 = vpop.eup %889 }
 0x1bb   : > { %911 = vrcp.f32 %v635_v50  ;;  %v638_v52 = vadd.f32 1.0, %v890_v51 }
 0x1bc   : > { %v892_v53 = vpop.eup %891 }
 0x1bd   : > { %913 = vrcp.f32 %v638_v52  ;;  %v637_v54 = vadd.f32 1.0, %v892_v53 }
 0x1be   : > { %v894_v55 = vpop.eup %893 }
 0x1bf   : > { %v896_v56 = vpop.eup %895  ;;  %v668_v57 = vmul.f32 %v894_v55, %v993_v5  ;;  %915 = vrcp.f32 %v637_v54 }
 0x1c0   : > { %v898_v58 = vpop.eup %897  ;;  %v640_v59 = vadd.f32 1.0, %v896_v56 }
 0x1c1   : > { %v900_v60 = vpop.eup %899  ;;  %680 = vst.msk [vmem:[%s1065_s16 + $0x8] sm:$0xff] %vm251_vm0, %v668_v57  ;;  %v667_v61 = vmul.f32 %v898_v58, %v991_v4 }
 0x1c2   : > { %v902_v62 = vpop.eup %901  ;;  %917 = vrcp.f32 %v640_v59  ;;  %v639_v63 = vadd.f32 1.0, %v900_v60 }
 0x1c3   : > { %v904_v0 = vpop.eup %903  ;;  %679 = vst.msk [vmem:[%s1065_s16] sm:$0xff] %vm251_vm0, %v667_v61  ;;  %v670_v1 = vmul.f32 %v902_v62, %v1003_v7 }
 0x1c4   : > { %v906_v5 = vpop.eup %905  ;;  %919 = vrcp.f32 %v639_v63  ;;  %v642_v2 = vadd.f32 1.0, %v904_v0 }
 0x1c5   : > { %v908_v3 = vpop.eup %907  ;;  %682 = vst.msk [vmem:[%s1065_s16 + $0x18] sm:$0xff] %vm251_vm0, %v670_v1  ;;  %v669_v4 = vmul.f32 %v906_v5, %v995_v6 }
 0x1c6   : > { %v910_v16 = vpop.eup %909  ;;  %921 = vrcp.f32 %v642_v2  ;;  %v641_v17 = vadd.f32 1.0, %v908_v3 }
 0x1c7   : > { %681 = vst.msk [vmem:[%s1065_s16 + $0x10] sm:$0xff] %vm251_vm0, %v669_v4  ;;  %v672_v18 = vmul.f32 %v910_v16, %v1011_v9 }
 0x1c8   : > { %v912_v7 = vpop.eup %911  ;;  %923 = vrcp.f32 %v641_v17 }
 0x1c9   : > { %684 = vst.msk [vmem:[%s1065_s16 + $0x28] sm:$0xff] %vm251_vm0, %v672_v18  ;;  %v671_v19 = vmul.f32 %v912_v7, %v1005_v8 }
 0x1ca   : > { %v914_v20 = vpop.eup %913 }
 0x1cb   : > { %683 = vst.msk [vmem:[%s1065_s16 + $0x20] sm:$0xff] %vm251_vm0, %v671_v19  ;;  %v674_v6 = vmul.f32 %v914_v20, %v1019_v11 }
 0x1cc   : > { %v916_v21 = vpop.eup %915 }
 0x1cd   : > { %686 = vst.msk [vmem:[%s1065_s16 + $0x38] sm:$0xff] %vm251_vm0, %v674_v6  ;;  %v673_v22 = vmul.f32 %v916_v21, %v1013_v10 }
 0x1cf   : > { %v918_v9 = vpop.eup %917  ;;  %685 = vst.msk [vmem:[%s1065_s16 + $0x30] sm:$0xff] %vm251_vm0, %v673_v22 }
 0x1d0   : > { %v676_v23 = vmul.f32 %v918_v9, %v1027_v13 }
 0x1d1   : > { %v920_v24 = vpop.eup %919 }
 0x1d2   : > { %688 = vst.msk [vmem:[%s1065_s16 + $0x48] sm:$0xff] %vm251_vm0, %v676_v23  ;;  %v675_v8 = vmul.f32 %v920_v24, %v1021_v12 }
 0x1d3   : > { %v922_v25 = vpop.eup %921 }
 0x1d4   : > { %687 = vst.msk [vmem:[%s1065_s16 + $0x40] sm:$0xff] %vm251_vm0, %v675_v8  ;;  %v678_v11 = vmul.f32 %v922_v25, %v1035_v15 }
 0x1d5   : > { %v924_v26 = vpop.eup %923 }
 0x1d6   : > { %690 = vst.msk [vmem:[%s1065_s16 + $0x58] sm:$0xff] %vm251_vm0, %v678_v11  ;;  %v677_v10 = vmul.f32 %v924_v26, %v1029_v14 }
 0x1d8   : > { %689 = vst.msk [vmem:[%s1065_s16 + $0x50] sm:$0xff] %vm251_vm0, %v677_v10 }
 0x1d9 PF: > { %s15_s18 = sadd.s32 1, %s931_s18  }
 0x1da   : > { %p12_p4 = scmp.ge.s32.totalorder %s15_s18, 4  }
 0x1dc   :  { %14 = sbr.rel (!%p12_p4) target bundleno = 1 (0x1), region = 70 }

</bundles_post_ra>
